<compile_context>
chip_gen: v7x
topology: tpu7x:2x2x1
jax: 0.10.0
libtpu: 0.0.40
codegen_flags: <defaults>
</compile_context>

<pallas_src>
import functools

import jax
import jax.numpy as jnp
from jax import lax
from jax.experimental import pallas as pl
from jax.experimental.pallas import tpu as pltpu


def _round_up(x, m):
    return (x + m - 1) // m * m


def _attention_kernel(seq_len, rnn_ref, fh_ref, fhp_ref, w_attn_ref,
                      b_attn_ref, w_ctx_ref, hid_ref, attw_ref):
    bb, sp, hp = rnn_ref.shape

    rnn = rnn_ref[...]                          # (Bb, Sp, Hp) compute dtype
    fh = fh_ref[...]                            # (Bb, Hp) f32

    # ---- attn projection: one MXU GEMM, M = Bb*Sp rows -------------------
    # Sp % 8 == 0 and Hp % 128 == 0 (wrapper-guaranteed) => free-view reshape.
    rnn2d = rnn.reshape(bb * sp, hp)
    proj = jnp.dot(rnn2d, w_attn_ref[...],
                   preferred_element_type=jnp.float32)         # (Bb*Sp, Hp) f32
    proj = (proj + b_attn_ref[...]).reshape(bb, sp, hp)

    # ---- scores: VPU multiply + XLU lane reduction over H ----------------
    scores = jnp.sum(proj * fh[:, None, :], axis=-1)           # (Bb, Sp) f32

    # Mask padded sequence positions (only emitted when Sp > seq_len).
    if sp != seq_len:
        valid = lax.broadcasted_iota(jnp.int32, (1, sp), 1) < seq_len
        scores = jnp.where(valid, scores, -jnp.inf)

    # ---- softmax over the sequence (lane) axis, f32 -----------------------
    m = jnp.max(scores, axis=-1, keepdims=True)
    e = jnp.exp(scores - m)
    denom = jnp.sum(e, axis=-1, keepdims=True)
    r = pl.reciprocal(denom, approx=True)       # EUP slot
    r = r * (2.0 - denom * r)                   # one Newton step -> f32-exact
    attw = e * r                                # (Bb, Sp) f32

    # ---- context: VPU multiply + XLU sublane reduction over S -------------
    ctx = jnp.sum(attw[:, :, None] * rnn.astype(jnp.float32), axis=1)  # (Bb, Hp)

    # ---- concat_linear, context half (fh half is hoisted to the wrapper) --
    hid_pre = jnp.dot(ctx.astype(w_ctx_ref.dtype), w_ctx_ref[...],
                      preferred_element_type=jnp.float32) + fhp_ref[...]

    hid_ref[...] = jnp.tanh(hid_pre).astype(hid_ref.dtype)     # (Bb, Hp)
    attw_ref[...] = attw.astype(attw_ref.dtype)                # (Bb, Sp)


def _vmem_capacity_bytes():
    try:
        return int(pltpu.get_tpu_info().vmem_capacity_bytes)
    except Exception:
        return 64 * 1024 * 1024        # conservative fallback (v7x per-TC)


def _pick_block_b(batch, sp, hp, compute_itemsize, vmem_budget):
    """Maximize the batch block under a VMEM budget (no forced step count)."""
    # Per batch element per step: double-buffered rnn input block (compute
    # dtype) + f32 temporaries (proj + f32 copy of rnn for the context
    # reduction) + small per-row vectors / outputs.
    per_b = sp * hp * (2 * compute_itemsize + 8) + 4 * (8 * hp + 6 * sp)
    # Fixed: two (Hp, Hp) weights double-buffered + bias + compiler slack.
    fixed = 2 * 2 * hp * hp * compute_itemsize + 8 * hp + (2 << 20)
    avail = vmem_budget - fixed
    if avail <= per_b:
        return 1
    return int(max(1, min(batch, avail // per_b)))


def attention_forward(rnn_outputs, final_hidden_state, w_attn, b_attn,
                      w_concat, b_concat, *, block_b=None,
                      compute_dtype=jnp.bfloat16):
    """Pallas implementation of Attention.forward.

    rnn_outputs:        (B, S, H)
    final_hidden_state: (B, H)
    w_attn:   (H, H)   PyTorch Linear weight (out, in)
    b_attn:   (H,)
    w_concat: (H, 2H)  PyTorch Linear weight (out, in)
    b_concat: (H,)
    Returns attn_hidden (B, H), attn_weights (B, S).
    """
    B, S, H = rnn_outputs.shape
    Sp = _round_up(S, 8)         # sublane multiple -> free in-kernel reshape
    Hp = _round_up(H, 128)       # lane multiple    -> dense stores / MXU K,N
    c_dt = jnp.dtype(compute_dtype)

    capacity = _vmem_capacity_bytes()
    vmem_limit = min(int(capacity * 7 // 8), 128 * 1024 * 1024)
    if block_b is None:
        block_b = _pick_block_b(B, Sp, Hp, c_dt.itemsize,
                                int(vmem_limit * 0.7))
    nb = pl.cdiv(B, block_b)
    Bp = nb * block_b

    f32 = jnp.float32
    rnn_f = rnn_outputs.astype(f32)
    fh_f = final_hidden_state.astype(f32)
    w_attn_f = w_attn.astype(f32)
    b_attn_f = b_attn.astype(f32)
    w_cat_f = w_concat.astype(f32)
    b_cat_f = b_concat.astype(f32)

    # fh half of concat_linear hoisted out of the kernel: one full-B XLA GEMM
    # with the bias folded in.
    w_fh = w_cat_f[:, H:]                                     # (H, H) (out,in)
    fh_proj = fh_f @ w_fh.T + b_cat_f[None, :]                # (B, H) f32

    # Pre-transposed (in, out) weights — MXU-native contraction layout.
    w_attn_t = jnp.transpose(w_attn_f)                        # (H, H)
    w_ctx_t = jnp.transpose(w_cat_f[:, :H])                   # (H, H)

    # Zero-pad batch/seq/hidden to (Bp, Sp, Hp).  Padded sequence positions
    # are masked inside the kernel; everything is sliced off below.
    rnn_p = jnp.pad(rnn_f, ((0, Bp - B), (0, Sp - S), (0, Hp - H)))
    fh_p = jnp.pad(fh_f, ((0, Bp - B), (0, Hp - H)))
    fhp_p = jnp.pad(fh_proj, ((0, Bp - B), (0, Hp - H)))
    w_attn_p = jnp.pad(w_attn_t, ((0, Hp - H), (0, Hp - H)))
    w_ctx_p = jnp.pad(w_ctx_t, ((0, Hp - H), (0, Hp - H)))
    b_attn_p = jnp.pad(b_attn_f, ((0, Hp - H),)).reshape(1, Hp)

    # bf16 into the MXU (rnn stream + weights); biases / fh / fh_proj and all
    # accumulation, softmax, tanh stay f32.
    rnn_c = rnn_p.astype(c_dt)
    w_attn_c = w_attn_p.astype(c_dt)
    w_ctx_c = w_ctx_p.astype(c_dt)

    grid_spec = pltpu.PrefetchScalarGridSpec(
        num_scalar_prefetch=0,
        grid=(nb,),
        in_specs=[
            pl.BlockSpec((block_b, Sp, Hp), lambda b: (b, 0, 0)),  # rnn
            pl.BlockSpec((block_b, Hp), lambda b: (b, 0)),         # fh
            pl.BlockSpec((block_b, Hp), lambda b: (b, 0)),         # fh_proj
            pl.BlockSpec((Hp, Hp), lambda b: (0, 0)),              # w_attn^T
            pl.BlockSpec((1, Hp), lambda b: (0, 0)),               # b_attn
            pl.BlockSpec((Hp, Hp), lambda b: (0, 0)),              # w_ctx^T
        ],
        out_specs=[
            pl.BlockSpec((block_b, Hp), lambda b: (b, 0)),         # attn_hidden
            pl.BlockSpec((block_b, Sp), lambda b: (b, 0)),         # attn_weights
        ],
    )

    flops = int(2 * Bp * Sp * Hp * Hp        # projection GEMM
                + 2 * Bp * Sp * Hp           # scores (VPU/XLU)
                + 2 * Bp * Sp * Hp           # context (VPU/XLU)
                + 2 * Bp * Hp * Hp)          # concat-linear (context half)
    transcendentals = int(Bp * Sp + Bp * Hp + Bp)      # exp + tanh + recip
    bytes_accessed = int(
        c_dt.itemsize * (Bp * Sp * Hp + 2 * Hp * Hp)
        + 4 * (2 * Bp * Hp + Hp + Bp * Hp + Bp * Sp))
    cost = pl.CostEstimate(flops=flops, transcendentals=transcendentals,
                           bytes_accessed=bytes_accessed)

    kernel = functools.partial(_attention_kernel, S)

    attn_hidden, attn_weights = pl.pallas_call(
        kernel,
        out_shape=(
            jax.ShapeDtypeStruct((Bp, Hp), jnp.float32),
            jax.ShapeDtypeStruct((Bp, Sp), jnp.float32),
        ),
        grid_spec=grid_spec,
        compiler_params=pltpu.CompilerParams(
            dimension_semantics=("parallel",),
            vmem_limit_bytes=vmem_limit),
        cost_estimate=cost,
    )(rnn_c, fh_p, fhp_p, w_attn_c, b_attn_p, w_ctx_c)

    return attn_hidden[:B, :H], attn_weights[:B, :S]


def _reference(rnn_outputs, fh, w_attn, b_attn, w_cat, b_cat):
    """Pure-JAX reference mirroring the PyTorch forward."""
    proj = jnp.einsum("bsh,oh->bso", rnn_outputs, w_attn) + b_attn
    scores = jnp.einsum("bsh,bh->bs", proj, fh)
    attw = jax.nn.softmax(scores, axis=1)
    ctx = jnp.einsum("bsh,bs->bh", rnn_outputs, attw)
    cat = jnp.concatenate([ctx, fh], axis=1)
    hid = jnp.tanh(jnp.einsum("bi,oi->bo", cat, w_cat) + b_cat)
    return hid, attw


if __name__ == "__main__":
    B, S, H = 2, 8, 32
    key = jax.random.PRNGKey(0)
    k1, k2, k3, k4, k5, k6 = jax.random.split(key, 6)

    rnn_outputs = jax.random.normal(k1, (B, S, H), dtype=jnp.float32)
    final_hidden = jax.random.normal(k2, (B, H), dtype=jnp.float32)

    # nn.Linear-shaped parameters: attn = Linear(H, H); concat = Linear(2H, H).
    w_attn = jax.random.uniform(k3, (H, H), minval=-0.1, maxval=0.1,
                                dtype=jnp.float32)
    b_attn = jax.random.uniform(k4, (H,), minval=-0.1, maxval=0.1,
                                dtype=jnp.float32)
    w_concat = jax.random.uniform(k5, (H, 2 * H), minval=-0.1, maxval=0.1,
                                  dtype=jnp.float32)
    b_concat = jax.random.uniform(k6, (H,), minval=-0.1, maxval=0.1,
                                  dtype=jnp.float32)

    hid_ref, attw_ref = _reference(rnn_outputs, final_hidden,
                                   w_attn, b_attn, w_concat, b_concat)

    # 1) f32 compute path — tight tolerance (validates structure/padding).
    hid32, attw32 = attention_forward(rnn_outputs, final_hidden,
                                      w_attn, b_attn, w_concat, b_concat,
                                      compute_dtype=jnp.float32)
    jax.block_until_ready((hid32, attw32))
    assert hid32.shape == (B, H) and attw32.shape == (B, S)
    assert jnp.allclose(hid32, hid_ref, atol=1e-5, rtol=1e-5)
    assert jnp.allclose(attw32, attw_ref, atol=1e-5, rtol=1e-5)

    # 2) default bf16 MXU path — loose tolerance (bf16 matmul rounding).
    hid_bf, attw_bf = attention_forward(rnn_outputs, final_hidden,
                                        w_attn, b_attn, w_concat, b_concat)
    jax.block_until_ready((hid_bf, attw_bf))
    assert jnp.allclose(hid_bf, hid_ref, atol=5e-2, rtol=5e-2)
    assert jnp.allclose(attw_bf, attw_ref, atol=5e-2, rtol=5e-2)

    # 3) padded batch tail + multi-step grid: B=3 with block_b=2 (bf16).
    B3 = 3
    rnn_b3 = jax.random.normal(k5, (B3, S, H), dtype=jnp.float32)
    fh_b3 = jax.random.normal(k6, (B3, H), dtype=jnp.float32)
    hid3, attw3 = attention_forward(rnn_b3, fh_b3,
                                    w_attn, b_attn, w_concat, b_concat,
                                    block_b=2)
    jax.block_until_ready((hid3, attw3))
    hid3_ref, attw3_ref = _reference(rnn_b3, fh_b3,
                                     w_attn, b_attn, w_concat, b_concat)
    assert hid3.shape == (B3, H) and attw3.shape == (B3, S)
    assert jnp.allclose(hid3, hid3_ref, atol=5e-2, rtol=5e-2)
    assert jnp.allclose(attw3, attw3_ref, atol=5e-2, rtol=5e-2)

    # 4) non-multiple-of-8 sequence length (exercises the -inf score mask),
    #    f32 path for a tight check.
    S4 = 5
    rnn_s5 = jax.random.normal(k3, (B, S4, H), dtype=jnp.float32)
    fh_s5 = jax.random.normal(k4, (B, H), dtype=jnp.float32)
    hid5, attw5 = attention_forward(rnn_s5, fh_s5,
                                    w_attn, b_attn, w_concat, b_concat,
                                    compute_dtype=jnp.float32)
    jax.block_until_ready((hid5, attw5))
    hid5_ref, attw5_ref = _reference(rnn_s5, fh_s5,
                                     w_attn, b_attn, w_concat, b_concat)
    assert hid5.shape == (B, H) and attw5.shape == (B, S4)
    assert jnp.allclose(hid5, hid5_ref, atol=1e-5, rtol=1e-5)
    assert jnp.allclose(attw5, attw5_ref, atol=1e-5, rtol=1e-5)

    print("KERNEL_OK")
</pallas_src>

<mosaic_0001>
module attributes {stable_mosaic.version = 11 : i64} {
  func.func @_attention_kernel(%arg0: i32, %arg1: memref<2x8x128xf32, #tpu.memory_space<vmem>>, %arg2: memref<2x128xf32, #tpu.memory_space<vmem>>, %arg3: memref<2x128xf32, #tpu.memory_space<vmem>>, %arg4: memref<128x128xf32, #tpu.memory_space<vmem>>, %arg5: memref<1x128xf32, #tpu.memory_space<vmem>>, %arg6: memref<128x128xf32, #tpu.memory_space<vmem>>, %arg7: memref<2x128xf32, #tpu.memory_space<vmem>>, %arg8: memref<2x8xf32, #tpu.memory_space<vmem>>) attributes {dimension_semantics = [#tpu.dimension_semantics<parallel>], iteration_bounds = array<i64: 1>, scalar_prefetch = 0 : i64, scratch_operands = 0 : i64, tpu.core_type = #tpu.core_type<tc>, window_params = [{transform_indices = @transform_0, window_bounds = array<i64: 2, 8, 128>}, {transform_indices = @transform_1, window_bounds = array<i64: 2, 128>}, {transform_indices = @transform_2, window_bounds = array<i64: 2, 128>}, {pipeline_mode = #tpu.pipeline_mode<synchronous>, transform_indices = @transform_3, window_bounds = array<i64: 128, 128>}, {pipeline_mode = #tpu.pipeline_mode<synchronous>, transform_indices = @transform_4, window_bounds = array<i64: 1, 128>}, {pipeline_mode = #tpu.pipeline_mode<synchronous>, transform_indices = @transform_5, window_bounds = array<i64: 128, 128>}, {transform_indices = @transform_6, window_bounds = array<i64: 2, 128>}, {transform_indices = @transform_7, window_bounds = array<i64: 2, 8>}]} {
    %c0 = arith.constant 0 : index
    %c0_0 = arith.constant 0 : index
    %c0_1 = arith.constant 0 : index
    %0 = vector.load %arg1[%c0, %c0_0, %c0_1] : memref<2x8x128xf32, #tpu.memory_space<vmem>>, vector<2x8x128xf32>
    %c0_2 = arith.constant 0 : index
    %c0_3 = arith.constant 0 : index
    %1 = vector.load %arg2[%c0_2, %c0_3] : memref<2x128xf32, #tpu.memory_space<vmem>>, vector<2x128xf32>
    %2 = vector.shape_cast %0 : vector<2x8x128xf32> to vector<16x128xf32>
    %c0_4 = arith.constant 0 : index
    %c0_5 = arith.constant 0 : index
    %3 = vector.load %arg4[%c0_4, %c0_5] : memref<128x128xf32, #tpu.memory_space<vmem>>, vector<128x128xf32>
    %cst = arith.constant dense<0.000000e+00> : vector<16x128xf32>
    %4 = tpu.matmul %2, %3, %cst {dimension_numbers = #tpu.dot_dimension_numbers<[1], [0], [0], [1], [0, 0, 1, 1], [], []>} : vector<16x128xf32>, vector<128x128xf32>, vector<16x128xf32> -> vector<16x128xf32>
    %c0_6 = arith.constant 0 : index
    %c0_7 = arith.constant 0 : index
    %5 = vector.load %arg5[%c0_6, %c0_7] : memref<1x128xf32, #tpu.memory_space<vmem>>, vector<1x128xf32>
    %6 = vector.broadcast %5 : vector<1x128xf32> to vector<16x128xf32>
    %7 = arith.addf %4, %6 : vector<16x128xf32>
    %8 = vector.shape_cast %7 : vector<16x128xf32> to vector<2x8x128xf32>
    %9 = vector.shape_cast %1 : vector<2x128xf32> to vector<2x1x128xf32>
    %10 = vector.broadcast %9 : vector<2x1x128xf32> to vector<2x8x128xf32>
    %11 = arith.mulf %8, %10 : vector<2x8x128xf32>
    %cst_8 = arith.constant dense<0.000000e+00> : vector<2x8xf32>
    %12 = vector.multi_reduction <add>, %11, %cst_8 [2] : vector<2x8x128xf32> to vector<2x8xf32>
    %cst_9 = arith.constant dense<0xFF800000> : vector<2xf32>
    %13 = vector.multi_reduction <maximumf>, %12, %cst_9 [1] : vector<2x8xf32> to vector<2xf32>
    %14 = vector.shape_cast %13 : vector<2xf32> to vector<2x1xf32>
    %15 = vector.broadcast %14 : vector<2x1xf32> to vector<2x8xf32>
    %16 = arith.subf %12, %15 : vector<2x8xf32>
    %17 = math.exp %16 : vector<2x8xf32>
    %cst_10 = arith.constant dense<0.000000e+00> : vector<2xf32>
    %18 = vector.multi_reduction <add>, %17, %cst_10 [1] : vector<2x8xf32> to vector<2xf32>
    %19 = vector.shape_cast %18 : vector<2xf32> to vector<2x1xf32>
    %20 = tpu.reciprocal %19 {approx = true} : vector<2x1xf32> -> vector<2x1xf32>
    %21 = arith.mulf %19, %20 : vector<2x1xf32>
    %cst_11 = arith.constant 2.000000e+00 : f32
    %22 = vector.broadcast %cst_11 : f32 to vector<2x1xf32>
    %23 = arith.subf %22, %21 : vector<2x1xf32>
    %24 = arith.mulf %20, %23 : vector<2x1xf32>
    %25 = vector.broadcast %24 : vector<2x1xf32> to vector<2x8xf32>
    %26 = arith.mulf %17, %25 : vector<2x8xf32>
    %27 = vector.shape_cast %26 : vector<2x8xf32> to vector<2x8x1xf32>
    %28 = vector.broadcast %27 : vector<2x8x1xf32> to vector<2x8x128xf32>
    %29 = arith.mulf %28, %0 : vector<2x8x128xf32>
    %cst_12 = arith.constant dense<0.000000e+00> : vector<2x128xf32>
    %30 = vector.multi_reduction <add>, %29, %cst_12 [1] : vector<2x8x128xf32> to vector<2x128xf32>
    %c0_13 = arith.constant 0 : index
    %c0_14 = arith.constant 0 : index
    %31 = vector.load %arg6[%c0_13, %c0_14] : memref<128x128xf32, #tpu.memory_space<vmem>>, vector<128x128xf32>
    %cst_15 = arith.constant dense<0.000000e+00> : vector<2x128xf32>
    %32 = tpu.matmul %30, %31, %cst_15 {dimension_numbers = #tpu.dot_dimension_numbers<[1], [0], [0], [1], [0, 0, 1, 1], [], []>} : vector<2x128xf32>, vector<128x128xf32>, vector<2x128xf32> -> vector<2x128xf32>
    %c0_16 = arith.constant 0 : index
    %c0_17 = arith.constant 0 : index
    %33 = vector.load %arg3[%c0_16, %c0_17] : memref<2x128xf32, #tpu.memory_space<vmem>>, vector<2x128xf32>
    %34 = arith.addf %32, %33 : vector<2x128xf32>
    %35 = math.tanh %34 : vector<2x128xf32>
    %c0_18 = arith.constant 0 : index
    %c0_19 = arith.constant 0 : index
    %36 = vector.load %arg7[%c0_18, %c0_19] : memref<2x128xf32, #tpu.memory_space<vmem>>, vector<2x128xf32>
    tpu.vector_store %arg7[%c0_18, %c0_19], %35 {strides = array<i32>} : memref<2x128xf32, #tpu.memory_space<vmem>>, vector<2x128xf32>,
    %c0_20 = arith.constant 0 : index
    %c0_21 = arith.constant 0 : index
    %37 = vector.load %arg8[%c0_20, %c0_21] : memref<2x8xf32, #tpu.memory_space<vmem>>, vector<2x8xf32>
    tpu.vector_store %arg8[%c0_20, %c0_21], %26 {strides = array<i32>} : memref<2x8xf32, #tpu.memory_space<vmem>>, vector<2x8xf32>,
    return
  }
  func.func @transform_0(%arg0: i32) -> (i32, i32, i32) {
    %c0_i32 = arith.constant 0 : i32
    %c0_i32_0 = arith.constant 0 : i32
    %c0_i32_1 = arith.constant 0 : i32
    return %arg0, %c0_i32, %c0_i32_0 : i32, i32, i32
  }
  func.func @transform_1(%arg0: i32) -> (i32, i32) {
    %c0_i32 = arith.constant 0 : i32
    %c0_i32_0 = arith.constant 0 : i32
    return %arg0, %c0_i32 : i32, i32
  }
  func.func @transform_2(%arg0: i32) -> (i32, i32) {
    %c0_i32 = arith.constant 0 : i32
    %c0_i32_0 = arith.constant 0 : i32
    return %arg0, %c0_i32 : i32, i32
  }
  func.func @transform_3(%arg0: i32) -> (i32, i32) {
    %c0_i32 = arith.constant 0 : i32
    %c0_i32_0 = arith.constant 0 : i32
    %c0_i32_1 = arith.constant 0 : i32
    return %c0_i32, %c0_i32_0 : i32, i32
  }
  func.func @transform_4(%arg0: i32) -> (i32, i32) {
    %c0_i32 = arith.constant 0 : i32
    %c0_i32_0 = arith.constant 0 : i32
    %c0_i32_1 = arith.constant 0 : i32
    return %c0_i32, %c0_i32_0 : i32, i32
  }
  func.func @transform_5(%arg0: i32) -> (i32, i32) {
    %c0_i32 = arith.constant 0 : i32
    %c0_i32_0 = arith.constant 0 : i32
    %c0_i32_1 = arith.constant 0 : i32
    return %c0_i32, %c0_i32_0 : i32, i32
  }
  func.func @transform_6(%arg0: i32) -> (i32, i32) {
    %c0_i32 = arith.constant 0 : i32
    %c0_i32_0 = arith.constant 0 : i32
    return %arg0, %c0_i32 : i32, i32
  }
  func.func @transform_7(%arg0: i32) -> (i32, i32) {
    %c0_i32 = arith.constant 0 : i32
    %c0_i32_0 = arith.constant 0 : i32
    return %arg0, %c0_i32 : i32, i32
  }
}

</mosaic_0001>

<bundles_post_ra>
// kernel: tpu_custom_call.1
= control target key start
LH: loop header
LB: loop body
LE: loop exit
PB: predicated region body
PF: predicated region fallthrough
CT: control target
= control target key end

     0   :  { %13 = vsyncpa [#allocation3], 0  ;;  %s915_s0 = inlined_call_operand.hbm [shape: f32[2,8,128], index: 0, kind: input, shape index: {}]   ;;  %s916_s1 = inlined_call_operand.vmem [shape: f32[2,128], index: 1, kind: input, shape index: {}]   ;;  %s917_s2 = inlined_call_operand.vmem [shape: f32[2,128], index: 2, kind: input, shape index: {}]   ;;  %s918_s3 = inlined_call_operand.hbm [shape: f32[128,128], index: 3, kind: input, shape index: {}]   ;;  %s919_s4 = inlined_call_operand.vmem [shape: f32[1,128], index: 4, kind: input, shape index: {}]   ;;  %s920_s5 = inlined_call_operand.hbm [shape: f32[128,128], index: 5, kind: input, shape index: {}]   ;;  %s921_s6 = inlined_call_operand.hbm [shape: f32[2,128], index: 6, kind: output, shape index: {0}]   ;;  %s922_s7 = inlined_call_operand.hbm [shape: f32[2,8], index: 7, kind: output, shape index: {1}]  }
   0x1   :  { %14 = vsyncpa [#allocation6], 0 }
   0x2   :  { %15 = vsyncpa [#allocation4], 0 }
   0x3   :  { %16 = vsyncpa [#allocation10], 0  ;;  %s743_s24 = smov [#allocation5]   ;;  %s744_s26 = smov [#allocation2]  }
   0x4   :  { %s38_s25 = sshll.u32 %s743_s24, 4  ;;  %s22_s27 = sshll.u32 %s744_s26, 4  ;;  %s39_s25 = int_to_ptr.vmem [resolvable:$true] %s38_s25  ;;  %s795_s27 = int_to_ptr.vmem [resolvable:$true] %s22_s27 }
   0x5   :  { %s625_s30 = scalar_lea.hbm %s918_s3, 2048 }
   0x6   :  { %p626_p0 = scmp.ne.s32.totalorder %s918_s3, %s625_s30  ;;  %p629_p1 = scmp.lt.u32.totalorder %s625_s30, %s918_s3 }
   0x8   :  { %p631_p2 = pnand %p629_p1, %p626_p0 }
   0xa   :  { %634 = shalt.err (!%p631_p2)
}
   0xb   :  { %s635_s12 = scalar_lea.vmem %s39_s25, 2048  ;;  %p640_p4 = scmp.lt.s32.totalorder %s39_s25, %s39_s25 }
   0xc   :  { %p636_p3 = scmp.ne.s32.totalorder %s39_s25, %s635_s12  ;;  %p641_p5 = scmp.lt.s32.totalorder %s635_s12, %s635_s12 }
   0xe   :  { %p642_p6 = por %p641_p5, %p640_p4 }
  0x10   :  { %p643_p7 = pnand %p642_p6, %p636_p3 }
  0x12   :  { %646 = shalt.err (!%p643_p7)
}
  0x13   :  { %s745_s13 = smov 128   ;;  %s746_s14 = smov 8  }
  0x14   :  { %44 = dma.hbm_to_vmem [thread:$0]  %s918_s3, 2048, %s39_s25, [#allocation6], %s745_s13, %s745_s13, %s746_s14  }
  0x15   :  { %s647_s19 = scalar_lea.hbm %s915_s0, 256 }
  0x16   :  { %p648_p8 = scmp.ne.s32.totalorder %s915_s0, %s647_s19  ;;  %p651_p9 = scmp.lt.u32.totalorder %s647_s19, %s915_s0 }
  0x18   :  { %p653_p10 = pnand %p651_p9, %p648_p8 }
  0x1a   :  { %656 = shalt.err (!%p653_p10)
}
  0x1b   :  { %s657_s24 = scalar_lea.vmem %s795_s27, 256  ;;  %p662_p12 = scmp.lt.s32.totalorder %s795_s27, %s795_s27 }
  0x1c   :  { %p658_p11 = scmp.ne.s32.totalorder %s795_s27, %s657_s24  ;;  %p663_p13 = scmp.lt.s32.totalorder %s657_s24, %s657_s24 }
  0x1e   :  { %p664_p0 = por %p663_p13, %p662_p12 }
  0x20   :  { %p665_p1 = pnand %p664_p0, %p658_p11 }
  0x22   :  { %668 = shalt.err (!%p665_p1)
}
  0x23   :  { %28 = dma.hbm_to_vmem [thread:$0]  %s915_s0, 256, %s795_s27, [#allocation3], %s745_s13, %s745_s13, %s746_s14  }
  0x24   :  { %s747_s26 = smov [#allocation7]   ;;  %s669_s8 = scalar_lea.hbm %s920_s5, 2048 }
  0x25   :  { %s52_s28 = sshll.u32 %s747_s26, 4  ;;  %p670_p2 = scmp.ne.s32.totalorder %s920_s5, %s669_s8  ;;  %s53_s28 = int_to_ptr.vmem [resolvable:$true] %s52_s28 }
  0x26   :  { %p673_p3 = scmp.lt.u32.totalorder %s669_s8, %s920_s5 }
  0x28   :  { %p675_p4 = pnand %p673_p3, %p670_p2 }
  0x2a   :  { %678 = shalt.err (!%p675_p4)
}
  0x2b   :  { %s679_s15 = scalar_lea.vmem %s53_s28, 2048  ;;  %p684_p6 = scmp.lt.s32.totalorder %s53_s28, %s53_s28 }
  0x2c   :  { %p680_p5 = scmp.ne.s32.totalorder %s53_s28, %s679_s15  ;;  %p685_p7 = scmp.lt.s32.totalorder %s679_s15, %s679_s15 }
  0x2e   :  { %p686_p8 = por %p685_p7, %p684_p6 }
  0x30   :  { %p687_p9 = pnand %p686_p8, %p680_p5 }
  0x32   :  { %690 = shalt.err (!%p687_p9)
}
  0x33   :  { %58 = dma.hbm_to_vmem [thread:$0]  %s920_s5, 2048, %s53_s28, [#allocation6], %s745_s13, %s745_s13, %s746_s14  }
  0x34   :  { %735 = dma.done.wait [#allocation3], 256  }
  0x35   :  { %736 = vsyncadd [#allocation3], 4294967040 }
  0x36   :  { %737 = dma.done.wait [#allocation6], 4096  }
  0x37   :  { %738 = vsyncadd [#allocation6], 4294963200  ;;  %v71_v0 = vld [vmem:[#allocation5] sm:$0xff]  ;;  %v72_v1 = vld [vmem:[#allocation5 + $0x8] sm:$0xff]  ;;  %v748_v26 = vmov 1966171168   ;;  %v181_v28 = vlaneseq }
  0x38   :  { %v73_v2 = vld [vmem:[#allocation5 + $0x10] sm:$0xff]  ;;  %v547_v3 = vpack.c.bf16 %v72_v1, %v71_v0  ;;  %v74_v4 = vld [vmem:[#allocation5 + $0x18] sm:$0xff]  ;;  %v75_v6 = vld [vmem:[#allocation5 + $0x20] sm:$0xff]  ;;  %v179_v27 = vunpack.c.l.s4 %v748_v26  ;;  %vm220_vm0 = vcmask 1041409   ;;  %vm223_vm1 = vcmask 58368  }
  0x39   :  { %v551_v5 = vpack.c.bf16 %v74_v4, %v73_v2  ;;  %v76_v7 = vld [vmem:[#allocation5 + $0x28] sm:$0xff]  ;;  %v847_v9 = vld [vmem:[#allocation2] sm:$0xff]  ;;  %v78_v11 = vld [vmem:[#allocation5 + $0x38] sm:$0xff]  ;;  %v853_v30 = vshrl.u32 %v181_v28, 7  ;;  %v211_v46 = vand.u32 127, %v181_v28  ;;  %v749_v54 = vmov 0  }
  0x3a   :  { %548 = vmatprep.subr.bf16.mxu0 %v547_v3  ;;  %v555_v8 = vpack.c.bf16 %v76_v7, %v75_v6  ;;  %v77_v10 = vld [vmem:[#allocation5 + $0x30] sm:$0xff]  ;;  %509 = vmatprep.mubr.f32.mxu0 %v847_v9  ;;  %v79_v13 = vld [vmem:[#allocation5 + $0x40] sm:$0xff]  ;;  %v80_v14 = vld [vmem:[#allocation5 + $0x48] sm:$0xff]  ;;  %v180_v29 = vunpack.c.0.s8 %v179_v27  ;;  %vm751_vm2 = vmmov 0  }
  0x3b   :  { %550 = vmatpush3.bf16.msra.mxu0 %v547_v3  ;;  %v559_v12 = vpack.c.bf16 %v78_v11, %v77_v10  ;;  %v563_v15 = vpack.c.bf16 %v80_v14, %v79_v13  ;;  %v81_v16 = vld [vmem:[#allocation5 + $0x50] sm:$0xff]  ;;  %v82_v17 = vld [vmem:[#allocation5 + $0x58] sm:$0xff]  ;;  %v83_v19 = vld [vmem:[#allocation5 + $0x60] sm:$0xff]  ;;  %v860_v35 = vsub.s32 0, %v853_v30  ;;  %v868_v48 = vsub.s32 %v211_v46, %v853_v30  ;;  %616 = vset.pattern.permute.xlu0 %v749_v54 }
  0x3c   :  { %552 = vmatprep.subr.bf16.mxu0 %v551_v5  ;;  %v567_v18 = vpack.c.bf16 %v82_v17, %v81_v16  ;;  %v84_v20 = vld [vmem:[#allocation5 + $0x68] sm:$0xff]  ;;  %v85_v22 = vld [vmem:[#allocation5 + $0x70] sm:$0xff]  ;;  %v86_v23 = vld [vmem:[#allocation5 + $0x78] sm:$0xff]  ;;  %v183_v31 = vsub.s32 %v180_v29, %v853_v30  ;;  %615 = vset.pattern.permute.xlu1 %v749_v54  ;;  %v234_v55 = vsub.s32 1, %v853_v30  ;;  %v750_v11 = vmov 0.0|0.0  }
  0x3d   :  { %v571_v21 = vpack.c.bf16 %v84_v20, %v83_v19  ;;  %v575_v24 = vpack.c.bf16 %v86_v23, %v85_v22  ;;  %v850_v25 = vld [vmem:[#allocation2 + $0x8] sm:$0xff]  ;;  %v441_v32 = vld.sshfl [vmem:[%s916_s1] sm:$0x11 pattern:$0x75316420]  ;;  %v306_v7 = vld [vmem:[#allocation7] sm:$0xff]  ;;  %579 = vmatprep.subr.bf16.mxu1 %v750_v11 }
  0x3e   :  { %v177_v33 = vcombine.high %v441_v32, %v441_v32  ;;  %v184_v34 = vrot.slane %v441_v32, %v183_v31  ;;  %v440_v36 = vld [vmem:[%s919_s4] ss:$0 sm:$0xff]  ;;  %v309_v13 = vld [vmem:[#allocation7 + $0x18] sm:$0xff]  ;;  %v311_v16 = vld [vmem:[#allocation7 + $0x28] sm:$0xff]  ;;  %s753_s1 = smov [#allocation9]  }
  0x3f   :  { %554 = vmatpush3.bf16.msra.mxu0 %v551_v5  ;;  %v308_v10 = vld [vmem:[#allocation7 + $0x10] sm:$0xff]  ;;  %v313_v26 = vld [vmem:[#allocation7 + $0x38] sm:$0xff]  ;;  %v314_v30 = vld [vmem:[#allocation7 + $0x40] sm:$0xff]  ;;  %s426_s4 = sshll.u32 %s753_s1, 4  ;;  %s427_s4 = int_to_ptr.vmem [resolvable:$true] %s426_s4 }
  0x40   :  { %556 = vmatprep.subr.bf16.mxu0 %v555_v8  ;;  %v195_v38 = vrot.slane %v184_v34, %v860_v35  ;;  %v191_v39 = vrot.slane %v177_v33, %v183_v31  ;;  %v583_v14 = vpack.c.bf16 %v309_v13, %v308_v10  ;;  %v315_v31 = vld [vmem:[#allocation7 + $0x48] sm:$0xff]  ;;  %v316_v34 = vld [vmem:[#allocation7 + $0x50] sm:$0xff]  ;;  %s691_s17 = scalar_lea.vmem %s427_s4, 32  ;;  %p696_p11 = scmp.lt.s32.totalorder %s427_s4, %s427_s4 }
  0x41   :  { %v592_v33 = vpack.c.bf16 %v315_v31, %v314_v30  ;;  %p692_p10 = scmp.ne.s32.totalorder %s427_s4, %s691_s17  ;;  %p697_p12 = scmp.lt.s32.totalorder %s691_s17, %s691_s17 }
  0x42   :  { %v199_v44 = vrot.slane %v191_v39, %v860_v35 }
  0x43   :  { %558 = vmatpush3.bf16.msra.mxu0 %v555_v8  ;;  %v307_v8 = vld [vmem:[#allocation7 + $0x8] sm:$0xff]  ;;  %p698_p13 = por %p697_p12, %p696_p11 }
  0x44   :  { %560 = vmatprep.subr.bf16.mxu0 %v559_v12 }
  0x45   :  { %p699_p0 = pnand %p698_p13, %p692_p10 }
  0x47   :  { %562 = vmatpush3.bf16.msra.mxu0 %v559_v12  ;;  %v580_v12 = vpack.c.bf16 %v307_v8, %v306_v7 }
  0x48   :  { %564 = vmatprep.subr.bf16.mxu0 %v563_v15 }
  0x49   :  { %581 = vmatpush3.bf16.msra.mxu1 %v580_v12 }
  0x4a   :  { %582 = vmatprep.subr.bf16.mxu1 %v750_v11 }
  0x4b   :  { %566 = vmatpush3.bf16.msra.mxu0 %v563_v15  ;;  %v310_v15 = vld [vmem:[#allocation7 + $0x20] sm:$0xff] }
  0x4c   :  { %568 = vmatprep.subr.bf16.mxu0 %v567_v18  ;;  %v586_v17 = vpack.c.bf16 %v311_v16, %v310_v15 }
  0x4d   :  { %584 = vmatpush3.bf16.msra.mxu1 %v583_v14 }
  0x4e   :  { %585 = vmatprep.subr.bf16.mxu1 %v750_v11 }
  0x4f   :  { %570 = vmatpush3.bf16.msra.mxu0 %v567_v18 }
  0x50   :  { %572 = vmatprep.subr.bf16.mxu0 %v571_v21 }
  0x51   :  { %587 = vmatpush3.bf16.msra.mxu1 %v586_v17 }
  0x52   :  { %588 = vmatprep.subr.bf16.mxu1 %v750_v11 }
  0x53   :  { %574 = vmatpush3.bf16.msra.mxu0 %v571_v21 }
  0x54   :  { %576 = vmatprep.subr.bf16.mxu0 %v575_v24 }
  0x57   :  { %578 = vmatpush3.bf16.msra.mxu0 %v575_v24  ;;  %v312_v24 = vld [vmem:[#allocation7 + $0x30] sm:$0xff] }
  0x58   :  { %v589_v29 = vpack.c.bf16 %v313_v26, %v312_v24 }
  0x5a   :  { %510 = vmatmul.mubr.f32.vlgmr.msra.gmra.mrb[0].mxu0 %v850_v25  ;;  %590 = vmatpush3.bf16.msra.mxu1 %v589_v29 }
  0x5b   :  { %591 = vmatprep.subr.bf16.mxu1 %v750_v11 }
  0x5e   :  { %593 = vmatpush3.bf16.msra.mxu1 %v592_v33 }
  0x5f   :  { %594 = vmatprep.subr.bf16.mxu1 %v750_v11 }
 0x12d   :  { %v511_v37 = vpop.f32.mrb[0].mxu0 }
 0x12e   :  { %v160_v40 = vpop.f32.mrb[1].mxu0  ;;  %v166_v42 = vadd.f32 %v511_v37, %v440_v36 }
 0x12f   :  { %v161_v41 = vadd.f32 %v440_v36, %v160_v40  ;;  %v317_v36 = vld [vmem:[#allocation7 + $0x58] sm:$0xff]  ;;  %v320_v40 = vld [vmem:[#allocation7 + $0x70] sm:$0xff] }
 0x130   :  { %v203_v45 = vmul.f32 %v199_v44, %v166_v42  ;;  %v595_v37 = vpack.c.bf16 %v317_v36, %v316_v34 }
 0x131   :  { %v202_v43 = vmul.f32 %v195_v38, %v161_v41  ;;  %v319_v38 = vld [vmem:[#allocation7 + $0x68] sm:$0xff]  ;;  %v321_v41 = vld [vmem:[#allocation7 + $0x78] sm:$0xff] }
 0x132   :  { %596 = vmatpush3.bf16.msra.mxu1 %v595_v37  ;;  %v601_v42 = vpack.c.bf16 %v321_v41, %v320_v40 }
 0x133   :  { %204 = vadd.xlane.f32.xlu0 %v202_v43  ;;  %597 = vmatprep.subr.bf16.mxu1 %v750_v11  ;;  %v752_v43 = vmov 0.0  }
 0x134   :  { %544 = vmatprep.mubr.msk.f32.mxu1 %vm751_vm2, %v752_v43 }
 0x137   :  { %206 = vadd.xlane.f32.xlu0 %v203_v45 }
 0x1c0   :  { %v205_v47 = vpop.xlane.xlu0 %204 }
 0x1c1   :  { %v215_v50 = vrot.slane %v205_v47, %v868_v48 }
 0x1c4   :  { %v207_v49 = vpop.xlane.xlu0 %206 }
 0x1c5   :  { %v219_v51 = vrot.slane %v207_v49, %v868_v48 }
 0x1c7   :  { %v221_v52 = vsel %vm220_vm0, %v219_v51, %v215_v50 }
 0x1c8   :  { %v224_v53 = vsel %vm223_vm1, %v221_v52, -inf }
 0x1c9   :  { %225 = vmax.xlane.f32.xlu1 %v224_v53 }
 0x256   :  { %v226_v56 = vpop.xlane.xlu1 %225 }
 0x257   :  { %v231_v57 = vrot.slane %v226_v56, %v860_v35  ;;  %v235_v58 = vrot.slane %v226_v56, %v234_v55 }
 0x259   :  { %v238_v59 = vsub.f32 %v205_v47, %v231_v57  ;;  %v239_v60 = vsub.f32 %v207_v49, %v235_v58 }
 0x25b   :  { %v240_v61 = vmul.f32 1.442695, %v238_v59  ;;  %v242_v62 = vmul.f32 1.442695, %v239_v60 }
 0x25d   :  { %617 = vpow2.f32 %v240_v61 }
 0x25e   :  { %619 = vpow2.f32 %v242_v62 }
 0x267   :  { %v618_v63 = vpop.eup %617 }
 0x268   :  { %v620_v0 = vpop.eup %619  ;;  %247 = vperm.xlu1 %615, %v618_v63  }
 0x269   :  { %250 = vperm.xlu0 %616, %v620_v0  }
 0x2e7   :  { %v248_v1 = vpop.permute.xlu1 %247 }
 0x2e8   :  { %v251_v2 = vpop.permute.xlu0 %250  ;;  %v255_v3 = vrot.slane %v248_v1, %v868_v48 }
 0x2e9   :  { %v259_v4 = vrot.slane %v251_v2, %v868_v48 }
 0x2eb   :  { %v260_v5 = vsel %vm220_vm0, %v259_v4, %v255_v3 }
 0x2ec   :  { %v262_v6 = vsel %vm223_vm1, %v260_v5, 0.0 }
 0x2ed   :  { %263 = vadd.xlane.f32.xlu1 %v262_v6 }
 0x37a   :  { %v264_v18 = vpop.xlane.xlu1 %263 }
 0x37b   :  { %621 = vrcp.f32 %v264_v18 }
 0x385   :  { %v622_v19 = vpop.eup %621 }
 0x386   :  { %v266_v20 = vmul.f32 %v622_v19, %v264_v18 }
 0x388   :  { %v267_v21 = vsub.f32 2.0, %v266_v20 }
 0x38a   :  { %v268_v22 = vmul.f32 %v622_v19, %v267_v21 }
 0x38c   :  { %v273_v23 = vrot.slane %v268_v22, %v860_v35  ;;  %v277_v27 = vrot.slane %v268_v22, %v234_v55  ;;  %v318_v35 = vld [vmem:[#allocation7 + $0x60] sm:$0xff] }
 0x38d   :  { %v598_v39 = vpack.c.bf16 %v319_v38, %v318_v35 }
 0x38e   :  { %v280_v28 = vmul.f32 %v618_v63, %v273_v23  ;;  %v281_v32 = vmul.f32 %v620_v0, %v277_v27 }
 0x38f   :  { %599 = vmatpush3.bf16.msra.mxu1 %v598_v39 }
 0x390   :  { %284 = vperm.xlu0 %616, %v280_v28   ;;  %600 = vmatprep.subr.bf16.mxu1 %v750_v11 }
 0x393   :  { %602 = vmatpush3.bf16.msra.mxu1 %v601_v42 }
 0x394   :  { %289 = vperm.xlu0 %616, %v281_v32  }
 0x40f   :  { %v285_v44 = vpop.permute.xlu0 %284 }
 0x410   :  { %v292_v45 = vmul.f32 %v285_v44, %v847_v9  ;;  %v402_v50 = vrot.slane %v285_v44, %v868_v48 }
 0x412   :  { %v294_v46 = vrot.slane %v292_v45, 4 }
 0x413   :  { %v290_v47 = vpop.permute.xlu0 %289 }
 0x414   :  { %v295_v49 = vadd.f32 %v294_v46, %v292_v45  ;;  %v293_v51 = vmul.f32 %v290_v47, %v850_v25  ;;  %v406_v52 = vrot.slane %v290_v47, %v868_v48 }
 0x416   :  { %v296_v53 = vrot.slane %v295_v49, 2  ;;  %v300_v54 = vrot.slane %v293_v51, 4  ;;  %v407_v55 = vsel %vm220_vm0, %v406_v52, %v402_v50 }
 0x417   :  { %409 = vst.msk [vmem:[#allocation9] sm:$0x3] %vm223_vm1, %v407_v55 }
 0x418   :  { %v297_v56 = vadd.f32 %v296_v53, %v295_v49  ;;  %v301_v57 = vadd.f32 %v300_v54, %v293_v51 }
 0x41a   :  { %v302_v58 = vrot.slane %v301_v57, 2  ;;  %v298_v59 = vrot.slane %v297_v56, 1 }
 0x41c   :  { %v303_v9 = vadd.f32 %v302_v58, %v301_v57  ;;  %v299_v61 = vadd.f32 %v298_v59, %v297_v56 }
 0x41e   :  { %v304_v60 = vrot.slane %v303_v9, 1 }
 0x420   :  { %v305_v62 = vadd.f32 %v304_v60, %v303_v9 }
 0x422   :  { %v325_v63 = vsel %vm220_vm0, %v305_v62, %v299_v61 }
 0x423   :  { %545 = vmatmul.mubr.f32.vlgmr.msra.gmra.mrb[0].mxu1 %v325_v63 }
 0x424   :  { %702 = shalt.err (!%p699_p0)
}
 0x425   :  { %s703_s20 = scalar_lea.hbm %s922_s7, 32 }
 0x426   :  { %p704_p1 = scmp.ne.s32.totalorder %s922_s7, %s703_s20  ;;  %p707_p2 = scmp.lt.u32.totalorder %s703_s20, %s922_s7 }
 0x428   :  { %p709_p3 = pnand %p707_p2, %p704_p1 }
 0x42a   :  { %712 = shalt.err (!%p709_p3)
}
 0x42b   :  { %429 = dma.vmem_to_hbm [thread:$0]  %s427_s4, 32, %s922_s7, [#allocation10]   ;;  %v322_v25 = vld [vmem:[%s917_s2] sm:$0x3] }
 0x42c   :  { %s754_s29 = smov [#allocation8]  }
 0x42d   :  { %s416_s30 = sshll.u32 %s754_s29, 4  ;;  %s417_s30 = int_to_ptr.vmem [resolvable:$true] %s416_s30 }
 0x42e   :  { %s713_s8 = scalar_lea.vmem %s417_s30, 32  ;;  %p718_p5 = scmp.lt.s32.totalorder %s417_s30, %s417_s30 }
 0x42f   :  { %p714_p4 = scmp.ne.s32.totalorder %s417_s30, %s713_s8  ;;  %p719_p6 = scmp.lt.s32.totalorder %s713_s8, %s713_s8 }
 0x431   :  { %p720_p7 = por %p719_p6, %p718_p5 }
 0x433   :  { %p721_p8 = pnand %p720_p7, %p714_p4 }
 0x4f6   :  { %v393_v48 = vpop.f32.mrb[0].mxu1 }
 0x4f7   :  { %v394_v0 = vadd.f32 %v393_v48, %v322_v25  ;;  %v546_v1 = vpop.f32.mrb[1].mxu1 }
 0x4f9   :  { %623 = vtanh.f32 %v394_v0 }
 0x503   :  { %v624_v2 = vpop.eup %623 }
 0x504   :  { %398 = vst [vmem:[#allocation8] sm:$0x3] %v624_v2 }
 0x505   :  { %724 = shalt.err (!%p721_p8)
}
 0x506   :  { %s725_s2 = scalar_lea.hbm %s921_s6, 32 }
 0x507   :  { %p726_p9 = scmp.ne.s32.totalorder %s921_s6, %s725_s2  ;;  %p729_p10 = scmp.lt.u32.totalorder %s725_s2, %s921_s6 }
 0x509   :  { %p731_p11 = pnand %p729_p10, %p726_p9 }
 0x50b   :  { %734 = shalt.err (!%p731_p11)
}
 0x50c   :  { %419 = dma.vmem_to_hbm [thread:$0]  %s417_s30, 32, %s921_s6, [#allocation4]  }
 0x50d   :  { %739 = dma.done.wait [#allocation4], 32  }
 0x50e   :  { %740 = vsyncadd [#allocation4], 4294967264 }
 0x50f   :  { %741 = dma.done.wait [#allocation10], 32  }
 0x510   :  { %742 = vsyncadd [#allocation10], 4294967264 }
 0x511   :  { %436 = vsyncpa [#allocation3], 1 }
 0x512   :  { %437 = vsyncpa [#allocation6], 1 }
 0x513   :  { %438 = vsyncpa [#allocation4], 1 }
 0x514   :  { %439 = vsyncpa [#allocation10], 1 }

</bundles_post_ra>
